<compile_context>
chip_gen: v7x
topology: tpu7x:2x2x1
jax: 0.10.0
libtpu: 0.0.40
codegen_flags: <defaults>
</compile_context>

<pallas_src>
import jax
import jax.numpy as jnp
from jax.experimental import pallas as pl
from jax.experimental.pallas import tpu as pltpu


# ----------------------------------------------------------------------------
# helpers
# ----------------------------------------------------------------------------
def _round_up(a, b):
    return (a + b - 1) // b * b


def _align_rows(t):
    """Row-tile alignment: multiple of 128 when large, else multiple of 16."""
    t = max(int(t), 16)
    return (t // 128) * 128 if t >= 128 else _round_up(t, 16)


def _h_tile(H, pref):
    """Largest tile dividing H that is <= pref; prefers multiples of 256
    (v6e/v7x MXU is 2x256x256), then 128 (lane width), else full H."""
    if H <= pref:
        return H
    for step in (256, 128):
        if H % step == 0:
            t = (pref // step) * step
            while t >= step:
                if H % t == 0:
                    return t
                t -= step
    return H


def _vmem_capacity_bytes():
    """Per-chip VMEM capacity (128 MiB v5e/v6e, 64 MiB v7x); safe fallback."""
    try:
        info = pltpu.get_tpu_info()
        cap = getattr(info, "vmem_capacity_bytes", None)
        if cap:
            return int(cap)
    except Exception:
        pass
    return 64 << 20  # conservative (v7x-sized) fallback, valid everywhere


def _vmem_bytes(tm, tn, tk, mm_isz, in_isz, out_isz, use_scratch):
    b = (2 * tm * tk * mm_isz      # x (matmul operand), double-buffered
         + 2 * tk * tn * mm_isz    # W tile
         + 2 * tm * tn * in_isz    # residual-x tile
         + 2 * tm * tn * out_isz   # output tile
         + 2 * 2 * tn * 4)         # alpha, alpha*b (f32 rows)
    if use_scratch:
        b += tm * tn * 4           # f32 accumulator scratch
    return b


def _plan_tiles(M_pad, H, mm_isz, in_isz, out_isz, use_scratch, budget,
                tm_pref, tn_pref, tk_pref):
    big_vmem = budget >= (80 << 20)          # 128 MiB parts (v5e / v6e)
    if tm_pref is None:
        tm_pref = 2048 if big_vmem else 1024
    if tn_pref is None:
        tn_pref = 1024
    if tk_pref is None:
        tk_pref = 1024

    tn = _h_tile(H, tn_pref)
    tk = _h_tile(H, tk_pref)
    tm = _align_rows(min(tm_pref, M_pad))

    # Shrink until the double-buffered plan fits this chip's VMEM budget.
    while _vmem_bytes(tm, tn, tk, mm_isz, in_isz, out_isz, use_scratch) > budget:
        if tm > 256:
            tm = _align_rows(tm // 2)
        elif tk > 256 and tk % 2 == 0 and H % (tk // 2) == 0:
            tk //= 2
        elif tn > 256 and tn % 2 == 0 and H % (tn // 2) == 0:
            tn //= 2
        else:
            break
    return tm, tn, tk


# ----------------------------------------------------------------------------
# kernels
# ----------------------------------------------------------------------------
def _rezero_kernel_inplace(x_mm_ref, w_ref, x_res_ref, alpha_ref, ab_ref, o_ref):
    """f32 output: accumulate the matmul directly into the output block, which
    stays resident in VMEM across the (last, 'arbitrary') K axis."""
    k = pl.program_id(2)
    partial = jnp.dot(x_mm_ref[...], w_ref[...],
                      preferred_element_type=jnp.float32)

    @pl.when(k == 0)
    def _():
        o_ref[...] = partial

    @pl.when(k > 0)
    def _():
        o_ref[...] += partial

    @pl.when(k == pl.num_programs(2) - 1)
    def _():
        # ReZero epilogue: out = x + alpha * (x @ W) + alpha * b   (all f32)
        x = x_res_ref[...].astype(jnp.float32)
        o_ref[...] = x + alpha_ref[...] * o_ref[...] + ab_ref[...]


def _rezero_kernel_scratch(x_mm_ref, w_ref, x_res_ref, alpha_ref, ab_ref,
                           o_ref, acc_ref):
    """Non-f32 output: accumulate in an f32 VMEM scratch, cast in the epilogue."""
    k = pl.program_id(2)
    partial = jnp.dot(x_mm_ref[...], w_ref[...],
                      preferred_element_type=jnp.float32)

    @pl.when(k == 0)
    def _():
        acc_ref[...] = partial

    @pl.when(k > 0)
    def _():
        acc_ref[...] += partial

    @pl.when(k == pl.num_programs(2) - 1)
    def _():
        x = x_res_ref[...].astype(jnp.float32)
        o_ref[...] = (x + alpha_ref[...] * acc_ref[...]
                      + ab_ref[...]).astype(o_ref.dtype)


# ----------------------------------------------------------------------------
# wrapper
# ----------------------------------------------------------------------------
def sublayer_connection_rezero(x, w, b, alpha, *, tm=None, tn=None, tk=None,
                               compute_dtype="auto"):
    """Fused ReZero(x, Linear(x)) = x + alpha * (x @ W + b).

    x: (B, S, H); w: (H, H); b: (H,); alpha: (H,). Returns (B, S, H).
    compute_dtype: "auto" (default; bf16 MXU operands for f32 inputs),
    None (use x.dtype), or an explicit dtype. Accumulation and the residual
    epilogue are always f32.
    """
    B, S, H = x.shape
    M = B * S
    out_dtype = x.dtype

    # MXU operand dtype (accumulation stays f32 regardless).
    if isinstance(compute_dtype, str) and compute_dtype == "auto":
        mm_dtype = jnp.bfloat16 if x.dtype == jnp.float32 else x.dtype
    elif compute_dtype is None:
        mm_dtype = x.dtype
    else:
        mm_dtype = compute_dtype

    use_scratch = jnp.dtype(out_dtype) != jnp.dtype(jnp.float32)

    mm_isz = jnp.dtype(mm_dtype).itemsize
    in_isz = jnp.dtype(x.dtype).itemsize
    out_isz = jnp.dtype(out_dtype).itemsize

    # Generation-aware VMEM budget (leave headroom for compiler scratch).
    cap = _vmem_capacity_bytes()
    budget = (cap * 3) // 4

    # Light row padding only (16-row alignment); never pad to a full M tile.
    M_pad = _round_up(M, 16)
    tm_, tn_, tk_ = _plan_tiles(M_pad, H, mm_isz, in_isz, out_isz,
                                use_scratch, budget, tm, tn, tk)

    # ---- host-side prep --------------------------------------------------
    x2 = x.reshape(M, H)
    if M_pad != M:
        x2 = jnp.pad(x2, ((0, M_pad - M), (0, 0)))
    x_mm = x2.astype(mm_dtype)            # matmul operand (bf16 by default)
    w_mm = w.astype(mm_dtype)
    alpha_f32 = alpha.astype(jnp.float32).reshape(1, H)
    ab_f32 = (alpha.astype(jnp.float32) * b.astype(jnp.float32)).reshape(1, H)

    grid = (pl.cdiv(M_pad, tm_), H // tn_, H // tk_)

    vmem_bytes = _vmem_bytes(tm_, tn_, tk_, mm_isz, in_isz, out_isz, use_scratch)
    vmem_limit = min(max(vmem_bytes + (8 << 20), 32 << 20), cap)

    in_specs = [
        pl.BlockSpec((tm_, tk_), lambda i, j, k: (i, k)),   # x (matmul)
        pl.BlockSpec((tk_, tn_), lambda i, j, k: (k, j)),   # W
        pl.BlockSpec((tm_, tn_), lambda i, j, k: (i, j)),   # x (residual), K-invariant
        pl.BlockSpec((1, tn_), lambda i, j, k: (0, j)),     # alpha
        pl.BlockSpec((1, tn_), lambda i, j, k: (0, j)),     # alpha * b
    ]
    out_spec = pl.BlockSpec((tm_, tn_), lambda i, j, k: (i, j))

    if use_scratch:
        kernel = _rezero_kernel_scratch
        scratch = [pltpu.VMEM((tm_, tn_), jnp.float32)]
    else:
        kernel = _rezero_kernel_inplace
        scratch = []

    out = pl.pallas_call(
        kernel,
        out_shape=jax.ShapeDtypeStruct((M_pad, H), out_dtype),
        grid_spec=pltpu.PrefetchScalarGridSpec(
            num_scalar_prefetch=0,
            grid=grid,
            in_specs=in_specs,
            out_specs=out_spec,
            scratch_shapes=scratch,
        ),
        compiler_params=pltpu.CompilerParams(
            dimension_semantics=("parallel", "parallel", "arbitrary"),
            vmem_limit_bytes=int(vmem_limit),
        ),
    )(x_mm, w_mm, x2, alpha_f32, ab_f32)

    return out[:M].reshape(B, S, H)


# ----------------------------------------------------------------------------
# self-test
# ----------------------------------------------------------------------------
if __name__ == "__main__":
    # Small shapes consistent with the module: batch=2, seq=8, hidden=128.
    B, S, H = 2, 8, 128

    key = jax.random.PRNGKey(0)
    kx, kw, kb, ka = jax.random.split(key, 4)

    x = jax.random.normal(kx, (B, S, H), dtype=jnp.float32)
    w = jax.random.normal(kw, (H, H), dtype=jnp.float32) * 0.02
    b = jax.random.normal(kb, (H,), dtype=jnp.float32) * 0.02
    alpha0 = jnp.zeros((H,), dtype=jnp.float32)          # ReZero init
    alpha1 = jax.random.normal(ka, (H,), dtype=jnp.float32) * 0.1

    def ref(x, w, b, a):
        return x + a[None, None, :] * (x @ w + b[None, None, :])

    # 1) pure f32 path (tight tolerance).
    o0 = jax.block_until_ready(
        sublayer_connection_rezero(x, w, b, alpha0, compute_dtype=jnp.float32))
    o1 = jax.block_until_ready(
        sublayer_connection_rezero(x, w, b, alpha1, compute_dtype=jnp.float32))
    assert jnp.allclose(o0, ref(x, w, b, alpha0), atol=1e-5, rtol=1e-5)
    assert jnp.allclose(o1, ref(x, w, b, alpha1), atol=1e-5, rtol=1e-5)

    # 2) default path: bf16 MXU operands, f32 accumulation + epilogue.
    o2 = jax.block_until_ready(sublayer_connection_rezero(x, w, b, alpha1))
    assert jnp.allclose(o2, ref(x, w, b, alpha1), atol=2e-2, rtol=2e-2)

    # 3) non-multiple row count exercises the cdiv / ragged-M path.
    x_odd = x[:, :7, :]
    o3 = jax.block_until_ready(
        sublayer_connection_rezero(x_odd, w, b, alpha1, compute_dtype=jnp.float32))
    assert jnp.allclose(o3, ref(x_odd, w, b, alpha1), atol=1e-5, rtol=1e-5)

    # 4) bf16 inputs exercise the scratch-accumulator kernel variant.
    xb, wb, bb, ab = (t.astype(jnp.bfloat16) for t in (x, w, b, alpha1))
    o4 = jax.block_until_ready(sublayer_connection_rezero(xb, wb, bb, ab))
    ref4 = ref(xb.astype(jnp.float32), wb.astype(jnp.float32),
               bb.astype(jnp.float32), ab.astype(jnp.float32))
    assert jnp.allclose(o4.astype(jnp.float32), ref4, atol=5e-2, rtol=5e-2)

    # 5) multi-tile K/N grid (explicit small tiles) exercises the accumulation loop.
    H2 = 256
    k2 = jax.random.PRNGKey(1)
    kx2, kw2, kb2, ka2 = jax.random.split(k2, 4)
    x2_ = jax.random.normal(kx2, (B, S, H2), dtype=jnp.float32)
    w2_ = jax.random.normal(kw2, (H2, H2), dtype=jnp.float32) * 0.02
    b2_ = jax.random.normal(kb2, (H2,), dtype=jnp.float32) * 0.02
    a2_ = jax.random.normal(ka2, (H2,), dtype=jnp.float32) * 0.1
    o5 = jax.block_until_ready(
        sublayer_connection_rezero(x2_, w2_, b2_, a2_, tn=128, tk=128,
                                   compute_dtype=jnp.float32))
    assert jnp.allclose(o5, ref(x2_, w2_, b2_, a2_), atol=1e-5, rtol=1e-5)

    print("KERNEL_OK")
</pallas_src>

<mosaic_0001>
module attributes {stable_mosaic.version = 11 : i64} {
  func.func @_rezero_kernel_inplace(%arg0: i32, %arg1: i32, %arg2: i32, %arg3: memref<16x128xf32, #tpu.memory_space<vmem>>, %arg4: memref<128x128xf32, #tpu.memory_space<vmem>>, %arg5: memref<16x128xf32, #tpu.memory_space<vmem>>, %arg6: memref<1x128xf32, #tpu.memory_space<vmem>>, %arg7: memref<1x128xf32, #tpu.memory_space<vmem>>, %arg8: memref<16x128xf32, #tpu.memory_space<vmem>>) attributes {dimension_semantics = [#tpu.dimension_semantics<parallel>, #tpu.dimension_semantics<parallel>, #tpu.dimension_semantics<arbitrary>], iteration_bounds = array<i64: 1, 1, 1>, scalar_prefetch = 0 : i64, scratch_operands = 0 : i64, tpu.core_type = #tpu.core_type<tc>, window_params = [{transform_indices = @transform_0, window_bounds = array<i64: 16, 128>}, {transform_indices = @transform_1, window_bounds = array<i64: 128, 128>}, {transform_indices = @transform_2, window_bounds = array<i64: 16, 128>}, {transform_indices = @transform_3, window_bounds = array<i64: 1, 128>}, {transform_indices = @transform_4, window_bounds = array<i64: 1, 128>}, {transform_indices = @transform_5, window_bounds = array<i64: 16, 128>}]} {
    %c0 = arith.constant 0 : index
    %c0_0 = arith.constant 0 : index
    %0 = vector.load %arg3[%c0, %c0_0] : memref<16x128xf32, #tpu.memory_space<vmem>>, vector<16x128xf32>
    %c0_1 = arith.constant 0 : index
    %c0_2 = arith.constant 0 : index
    %1 = vector.load %arg4[%c0_1, %c0_2] : memref<128x128xf32, #tpu.memory_space<vmem>>, vector<128x128xf32>
    %cst = arith.constant dense<0.000000e+00> : vector<16x128xf32>
    %2 = tpu.matmul %0, %1, %cst {dimension_numbers = #tpu.dot_dimension_numbers<[1], [0], [0], [1], [0, 0, 1, 1], [], []>} : vector<16x128xf32>, vector<128x128xf32>, vector<16x128xf32> -> vector<16x128xf32>
    %c0_i32 = arith.constant 0 : i32
    %3 = arith.cmpi eq, %arg2, %c0_i32 : i32
    %4 = arith.extui %3 : i1 to i32
    %c0_i32_3 = arith.constant 0 : i32
    %5 = arith.cmpi ne, %4, %c0_i32_3 : i32
    scf.if %5 {
      %c0_8 = arith.constant 0 : index
      %c0_9 = arith.constant 0 : index
      %12 = vector.load %arg8[%c0_8, %c0_9] : memref<16x128xf32, #tpu.memory_space<vmem>>, vector<16x128xf32>
      tpu.vector_store %arg8[%c0_8, %c0_9], %2 {strides = array<i32>} : memref<16x128xf32, #tpu.memory_space<vmem>>, vector<16x128xf32>,
    } else {
    }
    %c0_i32_4 = arith.constant 0 : i32
    %6 = arith.cmpi sgt, %arg2, %c0_i32_4 : i32
    %7 = arith.extui %6 : i1 to i32
    %c0_i32_5 = arith.constant 0 : i32
    %8 = arith.cmpi ne, %7, %c0_i32_5 : i32
    scf.if %8 {
      %c0_8 = arith.constant 0 : index
      %c0_9 = arith.constant 0 : index
      %12 = vector.load %arg8[%c0_8, %c0_9] : memref<16x128xf32, #tpu.memory_space<vmem>>, vector<16x128xf32>
      %13 = arith.addf %12, %2 : vector<16x128xf32>
      %c0_10 = arith.constant 0 : index
      %c0_11 = arith.constant 0 : index
      %14 = vector.load %arg8[%c0_10, %c0_11] : memref<16x128xf32, #tpu.memory_space<vmem>>, vector<16x128xf32>
      tpu.vector_store %arg8[%c0_10, %c0_11], %13 {strides = array<i32>} : memref<16x128xf32, #tpu.memory_space<vmem>>, vector<16x128xf32>,
    } else {
    }
    %c0_i32_6 = arith.constant 0 : i32
    %9 = arith.cmpi eq, %arg2, %c0_i32_6 : i32
    %10 = arith.extui %9 : i1 to i32
    %c0_i32_7 = arith.constant 0 : i32
    %11 = arith.cmpi ne, %10, %c0_i32_7 : i32
    scf.if %11 {
      %c0_8 = arith.constant 0 : index
      %c0_9 = arith.constant 0 : index
      %12 = vector.load %arg5[%c0_8, %c0_9] : memref<16x128xf32, #tpu.memory_space<vmem>>, vector<16x128xf32>
      %c0_10 = arith.constant 0 : index
      %c0_11 = arith.constant 0 : index
      %13 = vector.load %arg6[%c0_10, %c0_11] : memref<1x128xf32, #tpu.memory_space<vmem>>, vector<1x128xf32>
      %c0_12 = arith.constant 0 : index
      %c0_13 = arith.constant 0 : index
      %14 = vector.load %arg8[%c0_12, %c0_13] : memref<16x128xf32, #tpu.memory_space<vmem>>, vector<16x128xf32>
      %15 = vector.broadcast %13 : vector<1x128xf32> to vector<16x128xf32>
      %16 = arith.mulf %15, %14 : vector<16x128xf32>
      %17 = arith.addf %12, %16 : vector<16x128xf32>
      %c0_14 = arith.constant 0 : index
      %c0_15 = arith.constant 0 : index
      %18 = vector.load %arg7[%c0_14, %c0_15] : memref<1x128xf32, #tpu.memory_space<vmem>>, vector<1x128xf32>
      %19 = vector.broadcast %18 : vector<1x128xf32> to vector<16x128xf32>
      %20 = arith.addf %17, %19 : vector<16x128xf32>
      %c0_16 = arith.constant 0 : index
      %c0_17 = arith.constant 0 : index
      %21 = vector.load %arg8[%c0_16, %c0_17] : memref<16x128xf32, #tpu.memory_space<vmem>>, vector<16x128xf32>
      tpu.vector_store %arg8[%c0_16, %c0_17], %20 {strides = array<i32>} : memref<16x128xf32, #tpu.memory_space<vmem>>, vector<16x128xf32>,
    } else {
    }
    return
  }
  func.func @transform_0(%arg0: i32, %arg1: i32, %arg2: i32) -> (i32, i32) {
    %c0_i32 = arith.constant 0 : i32
    return %arg0, %arg2 : i32, i32
  }
  func.func @transform_1(%arg0: i32, %arg1: i32, %arg2: i32) -> (i32, i32) {
    %c0_i32 = arith.constant 0 : i32
    return %arg2, %arg1 : i32, i32
  }
  func.func @transform_2(%arg0: i32, %arg1: i32, %arg2: i32) -> (i32, i32) {
    %c0_i32 = arith.constant 0 : i32
    return %arg0, %arg1 : i32, i32
  }
  func.func @transform_3(%arg0: i32, %arg1: i32, %arg2: i32) -> (i32, i32) {
    %c0_i32 = arith.constant 0 : i32
    %c0_i32_0 = arith.constant 0 : i32
    return %c0_i32, %arg1 : i32, i32
  }
  func.func @transform_4(%arg0: i32, %arg1: i32, %arg2: i32) -> (i32, i32) {
    %c0_i32 = arith.constant 0 : i32
    %c0_i32_0 = arith.constant 0 : i32
    return %c0_i32, %arg1 : i32, i32
  }
  func.func @transform_5(%arg0: i32, %arg1: i32, %arg2: i32) -> (i32, i32) {
    %c0_i32 = arith.constant 0 : i32
    return %arg0, %arg1 : i32, i32
  }
}

</mosaic_0001>

<bundles_post_ra>
// kernel: tpu_custom_call.1
= control target key start
LH: loop header
LB: loop body
LE: loop exit
PB: predicated region body
PF: predicated region fallthrough
CT: control target
= control target key end

     0   :  { %10 = vsyncpa [#allocation3], 0  ;;  %s514_s0 = inlined_call_operand.hbm [shape: f32[16,128], index: 0, kind: input, shape index: {}]   ;;  %s515_s1 = inlined_call_operand.hbm [shape: f32[128,128], index: 1, kind: input, shape index: {}]   ;;  %s516_s2 = inlined_call_operand.hbm [shape: f32[16,128], index: 2, kind: input, shape index: {}]   ;;  %s517_s3 = inlined_call_operand.vmem [shape: f32[1,128], index: 3, kind: input, shape index: {}]   ;;  %s518_s4 = inlined_call_operand.vmem [shape: f32[1,128], index: 4, kind: input, shape index: {}]   ;;  %s519_s5 = inlined_call_operand.hbm [shape: f32[16,128], index: 5, kind: output, shape index: {}]  }
   0x1   :  { %11 = vsyncpa [#allocation6], 0 }
   0x2   :  { %12 = vsyncpa [#allocation4], 0  ;;  %s405_s18 = smov [#allocation5]   ;;  %s406_s20 = smov [#allocation2]  }
   0x3   :  { %s30_s19 = sshll.u32 %s405_s18, 4  ;;  %s18_s21 = sshll.u32 %s406_s20, 4  ;;  %s31_s19 = int_to_ptr.vmem [resolvable:$true] %s30_s19  ;;  %s441_s21 = int_to_ptr.vmem [resolvable:$true] %s18_s21 }
   0x4   :  { %s311_s24 = scalar_lea.hbm %s515_s1, 2048 }
   0x5   :  { %p312_p0 = scmp.ne.s32.totalorder %s515_s1, %s311_s24  ;;  %p315_p1 = scmp.lt.u32.totalorder %s311_s24, %s515_s1 }
   0x7   :  { %p317_p2 = pnand %p315_p1, %p312_p0 }
   0x9   :  { %320 = shalt.err (!%p317_p2)
}
   0xa   :  { %s321_s29 = scalar_lea.vmem %s31_s19, 2048  ;;  %p326_p4 = scmp.lt.s32.totalorder %s31_s19, %s31_s19 }
   0xb   :  { %p322_p3 = scmp.ne.s32.totalorder %s31_s19, %s321_s29  ;;  %p327_p5 = scmp.lt.s32.totalorder %s321_s29, %s321_s29 }
   0xd   :  { %p328_p6 = por %p327_p5, %p326_p4 }
   0xf   :  { %p329_p7 = pnand %p328_p6, %p322_p3 }
  0x11   :  { %332 = shalt.err (!%p329_p7)
}
  0x12   :  { %s407_s30 = smov 128   ;;  %s408_s6 = smov 8  }
  0x13   :  { %36 = dma.hbm_to_vmem [thread:$0]  %s515_s1, 2048, %s31_s19, [#allocation6], %s407_s30, %s407_s30, %s408_s6  }
  0x14   :  { %s333_s11 = scalar_lea.hbm %s514_s0, 256 }
  0x15   :  { %p334_p8 = scmp.ne.s32.totalorder %s514_s0, %s333_s11  ;;  %p337_p9 = scmp.lt.u32.totalorder %s333_s11, %s514_s0 }
  0x17   :  { %p339_p10 = pnand %p337_p9, %p334_p8 }
  0x19   :  { %342 = shalt.err (!%p339_p10)
}
  0x1a   :  { %s343_s16 = scalar_lea.vmem %s441_s21, 256  ;;  %p348_p12 = scmp.lt.s32.totalorder %s441_s21, %s441_s21 }
  0x1b   :  { %p344_p11 = scmp.ne.s32.totalorder %s441_s21, %s343_s16  ;;  %p349_p13 = scmp.lt.s32.totalorder %s343_s16, %s343_s16 }
  0x1d   :  { %p350_p0 = por %p349_p13, %p348_p12 }
  0x1f   :  { %p351_p1 = pnand %p350_p0, %p344_p11 }
  0x21   :  { %354 = shalt.err (!%p351_p1)
}
  0x22   :  { %24 = dma.hbm_to_vmem [thread:$0]  %s514_s0, 256, %s441_s21, [#allocation3], %s407_s30, %s407_s30, %s408_s6  }
  0x23   :  { %s409_s18 = smov [#allocation7]   ;;  %s355_s23 = scalar_lea.hbm %s516_s2, 256 }
  0x24   :  { %s42_s19 = sshll.u32 %s409_s18, 4  ;;  %p356_p2 = scmp.ne.s32.totalorder %s516_s2, %s355_s23  ;;  %s43_s19 = int_to_ptr.vmem [resolvable:$true] %s42_s19 }
  0x25   :  { %p359_p3 = scmp.lt.u32.totalorder %s355_s23, %s516_s2 }
  0x27   :  { %p361_p4 = pnand %p359_p3, %p356_p2 }
  0x29   :  { %364 = shalt.err (!%p361_p4)
}
  0x2a   :  { %s365_s28 = scalar_lea.vmem %s43_s19, 256  ;;  %p370_p6 = scmp.lt.s32.totalorder %s43_s19, %s43_s19 }
  0x2b   :  { %p366_p5 = scmp.ne.s32.totalorder %s43_s19, %s365_s28  ;;  %p371_p7 = scmp.lt.s32.totalorder %s365_s28, %s365_s28 }
  0x2d   :  { %p372_p8 = por %p371_p7, %p370_p6 }
  0x2f   :  { %p373_p9 = pnand %p372_p8, %p366_p5 }
  0x31   :  { %376 = shalt.err (!%p373_p9)
}
  0x32   :  { %48 = dma.hbm_to_vmem [thread:$0]  %s516_s2, 256, %s43_s19, [#allocation6], %s407_s30, %s407_s30, %s408_s6  }
  0x33   :  { %399 = dma.done.wait [#allocation3], 256  }
  0x34   :  { %400 = vsyncadd [#allocation3], 4294967040 }
  0x35   :  { %401 = dma.done.wait [#allocation6], 2304  }
  0x36   :  { %402 = vsyncadd [#allocation6], 4294964992  ;;  %v64_v0 = vld [vmem:[#allocation5] sm:$0xff]  ;;  %v65_v1 = vld [vmem:[#allocation5 + $0x8] sm:$0xff]  ;;  %s410_s9 = smov [#allocation8]  }
  0x37   :  { %v66_v2 = vld [vmem:[#allocation5 + $0x10] sm:$0xff]  ;;  %v273_v3 = vpack.c.bf16 %v65_v1, %v64_v0  ;;  %v67_v4 = vld [vmem:[#allocation5 + $0x18] sm:$0xff]  ;;  %v68_v6 = vld [vmem:[#allocation5 + $0x20] sm:$0xff]  ;;  %s205_s10 = sshll.u32 %s410_s9, 4  ;;  %s206_s10 = int_to_ptr.vmem [resolvable:$true] %s205_s10 }
  0x38   :  { %v277_v5 = vpack.c.bf16 %v67_v4, %v66_v2  ;;  %v69_v7 = vld [vmem:[#allocation5 + $0x28] sm:$0xff]  ;;  %v62_v9 = vld [vmem:[#allocation2] sm:$0xff]  ;;  %v71_v11 = vld [vmem:[#allocation5 + $0x38] sm:$0xff]  ;;  %p382_p11 = scmp.lt.s32.totalorder %s206_s10, %s206_s10 }
  0x39   :  { %274 = vmatprep.subr.bf16.mxu0 %v273_v3  ;;  %v281_v8 = vpack.c.bf16 %v69_v7, %v68_v6  ;;  %v70_v10 = vld [vmem:[#allocation5 + $0x30] sm:$0xff]  ;;  %270 = vmatprep.mubr.f32.mxu0 %v62_v9  ;;  %v72_v13 = vld [vmem:[#allocation5 + $0x40] sm:$0xff]  ;;  %v73_v14 = vld [vmem:[#allocation5 + $0x48] sm:$0xff] }
  0x3a   :  { %276 = vmatpush3.bf16.msra.mxu0 %v273_v3  ;;  %v285_v12 = vpack.c.bf16 %v71_v11, %v70_v10  ;;  %v289_v15 = vpack.c.bf16 %v73_v14, %v72_v13  ;;  %v74_v16 = vld [vmem:[#allocation5 + $0x50] sm:$0xff]  ;;  %v75_v17 = vld [vmem:[#allocation5 + $0x58] sm:$0xff]  ;;  %v76_v19 = vld [vmem:[#allocation5 + $0x60] sm:$0xff] }
  0x3b   :  { %278 = vmatprep.subr.bf16.mxu0 %v277_v5  ;;  %v293_v18 = vpack.c.bf16 %v75_v17, %v74_v16  ;;  %v77_v20 = vld [vmem:[#allocation5 + $0x68] sm:$0xff]  ;;  %v78_v22 = vld [vmem:[#allocation5 + $0x70] sm:$0xff]  ;;  %v79_v23 = vld [vmem:[#allocation5 + $0x78] sm:$0xff] }
  0x3c   :  { %v297_v21 = vpack.c.bf16 %v77_v20, %v76_v19  ;;  %v301_v24 = vpack.c.bf16 %v79_v23, %v78_v22  ;;  %v63_v25 = vld [vmem:[#allocation2 + $0x8] sm:$0xff]  ;;  %v218_v26 = vld [vmem:[%s517_s3] ss:$0 sm:$0xff]  ;;  %v175_v28 = vld [vmem:[#allocation7 + $0x8] sm:$0xff]  ;;  %s377_s3 = scalar_lea.vmem %s206_s10, 256 }
  0x3d   :  { %v174_v30 = vld [vmem:[#allocation7] sm:$0xff]  ;;  %v219_v33 = vld [vmem:[%s518_s4] ss:$0 sm:$0xff]  ;;  %p378_p10 = scmp.ne.s32.totalorder %s206_s10, %s377_s3  ;;  %p383_p12 = scmp.lt.s32.totalorder %s377_s3, %s377_s3 }
  0x3e   :  { %280 = vmatpush3.bf16.msra.mxu0 %v277_v5 }
  0x3f   :  { %282 = vmatprep.subr.bf16.mxu0 %v281_v8  ;;  %p384_p13 = por %p383_p12, %p382_p11 }
  0x41   :  { %p385_p0 = pnand %p384_p13, %p378_p10 }
  0x42   :  { %284 = vmatpush3.bf16.msra.mxu0 %v281_v8 }
  0x43   :  { %286 = vmatprep.subr.bf16.mxu0 %v285_v12 }
  0x46   :  { %288 = vmatpush3.bf16.msra.mxu0 %v285_v12 }
  0x47   :  { %290 = vmatprep.subr.bf16.mxu0 %v289_v15 }
  0x4a   :  { %292 = vmatpush3.bf16.msra.mxu0 %v289_v15 }
  0x4b   :  { %294 = vmatprep.subr.bf16.mxu0 %v293_v18 }
  0x4e   :  { %296 = vmatpush3.bf16.msra.mxu0 %v293_v18 }
  0x4f   :  { %298 = vmatprep.subr.bf16.mxu0 %v297_v21 }
  0x52   :  { %300 = vmatpush3.bf16.msra.mxu0 %v297_v21 }
  0x53   :  { %302 = vmatprep.subr.bf16.mxu0 %v301_v24 }
  0x56   :  { %304 = vmatpush3.bf16.msra.mxu0 %v301_v24 }
  0x59   :  { %271 = vmatmul.mubr.f32.vlgmr.msra.gmra.mrb[0].mxu0 %v63_v25 }
 0x12c   :  { %v272_v27 = vpop.f32.mrb[0].mxu0 }
 0x12d   :  { %v146_v29 = vpop.f32.mrb[1].mxu0  ;;  %v186_v31 = vmul.f32 %v272_v27, %v218_v26 }
 0x12e   :  { %v185_v32 = vmul.f32 %v218_v26, %v146_v29 }
 0x12f   :  { %v188_v34 = vadd.f32 %v186_v31, %v175_v28 }
 0x130   :  { %v187_v35 = vadd.f32 %v185_v32, %v174_v30 }
 0x131   :  { %v197_v36 = vadd.f32 %v219_v33, %v188_v34 }
 0x132   :  { %v196_v37 = vadd.f32 %v219_v33, %v187_v35 }
 0x133   :  { %199 = vst [vmem:[#allocation8 + $0x8] sm:$0xff] %v197_v36 }
 0x134   :  { %198 = vst [vmem:[#allocation8] sm:$0xff] %v196_v37 }
 0x135   :  { %388 = shalt.err (!%p385_p0)
}
 0x136   :  { %s389_s4 = scalar_lea.hbm %s519_s5, 256 }
 0x137   :  { %p390_p1 = scmp.ne.s32.totalorder %s519_s5, %s389_s4  ;;  %p393_p2 = scmp.lt.u32.totalorder %s389_s4, %s519_s5 }
 0x139   :  { %p395_p3 = pnand %p393_p2, %p390_p1 }
 0x13b   :  { %398 = shalt.err (!%p395_p3)
}
 0x13c   :  { %211 = dma.vmem_to_hbm [thread:$0]  %s206_s10, 256, %s519_s5, [#allocation4], %s407_s30, %s407_s30, %s408_s6  }
 0x13d   :  { %403 = dma.done.wait [#allocation4], 256  }
 0x13e   :  { %404 = vsyncadd [#allocation4], 4294967040 }
 0x13f   :  { %215 = vsyncpa [#allocation3], 1 }
 0x140   :  { %216 = vsyncpa [#allocation6], 1 }
 0x141   :  { %217 = vsyncpa [#allocation4], 1 }

</bundles_post_ra>
